<compile_context>
chip_gen: v5e
topology: v5e:2x2
jax: 0.10.0
libtpu: 0.0.40
codegen_flags: <defaults>
</compile_context>

<pallas_src>
import functools

import jax
import jax.numpy as jnp
from jax.experimental import pallas as pl
from jax.experimental.pallas import tpu as pltpu


# ----------------------------------------------------------------------------
# Fused kernel: conv-as-matmul + bias + ReLU + global-avg-pool + FC logits
# ----------------------------------------------------------------------------
def fused_classifier_kernel(p_ref, wc_ref, bc_ref, wf_ref, bf_ref, o_ref,
                            *, tb, S):
    # p_ref : (tb*S, K)      bf16 patch rows for this batch tile
    # wc_ref: (K, Cout)      bf16 flattened conv weights
    # bc_ref: (1, Cout)      f32 conv bias
    # wf_ref: (Cout, Np)     f32 fc weights, pre-scaled by 1/S, nClass->Np pad
    # bf_ref: (1, Np)        f32 fc bias (padded)
    # o_ref : (1, tb, Np)    f32 logits for this batch tile
    Cout = wc_ref.shape[1]

    # Encoder stand-in conv as a single MXU matmul: bf16 operands, f32 acc.
    t = jnp.dot(p_ref[...], wc_ref[...],
                preferred_element_type=jnp.float32)          # (tb*S, Cout)
    t = jnp.maximum(t + bc_ref[...], 0.0)                    # bias + ReLU (f32)

    # Global average pool: sum over the S spatial rows of each image
    # (the 1/S scale is folded into wf on the host, so this is a plain sum).
    if tb == 1:
        pooled = jnp.sum(t, axis=0, keepdims=True)           # (1, Cout)
    else:
        pooled = jnp.sum(t.reshape(tb, S, Cout), axis=1)     # (tb, Cout)

    logits = jnp.dot(pooled, wf_ref[...],
                     preferred_element_type=jnp.float32) + bf_ref[...]
    o_ref[...] = logits[None]                                # (1, tb, Np)


def _pick_batch_tile(B, S, K, bytes_budget=4 << 20):
    """Largest batch tile whose bf16 (tb*S, K) block fits the budget while
    keeping >= 2 grid steps when B >= 2 (feeds both v7x TensorCores)."""
    best = 1
    for cand in range(1, B + 1):
        if B % cand != 0:
            continue
        if cand * S * K * 2 > bytes_budget:          # bf16 patch block
            continue
        if B >= 2 and B // cand < 2:                 # keep the parallel axis >= 2
            continue
        best = cand
    return best


# ----------------------------------------------------------------------------
# Host wrapper (mirrors Classifier.forward semantics)
# ----------------------------------------------------------------------------
@functools.partial(jax.jit, static_argnames=("stride",))
def classifier_forward(x_nchw, conv_w, conv_b, fc_w, fc_b, *, stride):
    B, Cin, H, W = x_nchw.shape
    k = conv_w.shape[0]
    Cout = conv_w.shape[-1]
    nClass = fc_w.shape[0]
    # Stand-in encoder uses non-overlapping patches (stride == kernel size).
    assert stride == k and H % k == 0 and W % k == 0
    Ho, Wo = H // k, W // k
    S = Ho * Wo
    K = k * k * Cin                      # contraction dim, kept UNPADDED in HBM
    Np = pl.cdiv(nClass, 128) * 128      # lane-dense FC / output width

    tb = _pick_batch_tile(B, S, K)
    nb = B // tb

    # Layout prep: single permute of the input bytes (stride == k), bf16 cast.
    # Row order within K is (ki, kj, Cin), matching conv_w.reshape(K, Cout).
    patches = x_nchw.reshape(B, Cin, Ho, k, Wo, k)
    patches = jnp.transpose(patches, (0, 2, 4, 3, 5, 1))     # (B,Ho,Wo,ki,kj,Cin)
    patches = patches.reshape(nb, tb * S, K).astype(jnp.bfloat16)

    w_conv = conv_w.reshape(K, Cout).astype(jnp.bfloat16)
    b_conv = conv_b.reshape(1, Cout).astype(jnp.float32)
    # Fold the 1/S pooling scale into the FC weights; pad nClass to 128 lanes.
    w_fc = jnp.pad((fc_w.T / S).astype(jnp.float32), ((0, 0), (0, Np - nClass)))
    b_fc = jnp.pad(fc_b.astype(jnp.float32), (0, Np - nClass)).reshape(1, Np)

    kernel = functools.partial(fused_classifier_kernel, tb=tb, S=S)

    out = pl.pallas_call(
        kernel,
        out_shape=jax.ShapeDtypeStruct((nb, tb, Np), jnp.float32),
        grid_spec=pltpu.PrefetchScalarGridSpec(
            num_scalar_prefetch=0,
            grid=(nb,),
            in_specs=[
                # patches: one (tb*S, K) block per batch tile; leading dim squeezed
                pl.BlockSpec((None, tb * S, K), lambda b: (b, 0, 0)),
                # small weights/biases: full blocks, resident across the grid
                pl.BlockSpec((K, Cout), lambda b: (0, 0)),
                pl.BlockSpec((1, Cout), lambda b: (0, 0)),
                pl.BlockSpec((Cout, Np), lambda b: (0, 0)),
                pl.BlockSpec((1, Np), lambda b: (0, 0)),
            ],
            out_specs=pl.BlockSpec((1, tb, Np), lambda b: (b, 0, 0)),
        ),
        compiler_params=pltpu.CompilerParams(
            dimension_semantics=("parallel",),
            vmem_limit_bytes=32 * 1024 * 1024,
        ),
    )(patches, w_conv, b_conv, w_fc, b_fc)

    return out.reshape(B, Np)[:, :nClass]


# ----------------------------------------------------------------------------
# Pure-JAX f32 reference (independent of the kernel's layout tricks)
# ----------------------------------------------------------------------------
def reference_forward(x_nchw, conv_w, conv_b, fc_w, fc_b, stride):
    x = jnp.transpose(x_nchw, (0, 2, 3, 1)).astype(jnp.float32)
    feat = jax.lax.conv_general_dilated(
        x, conv_w, window_strides=(stride, stride), padding="VALID",
        dimension_numbers=("NHWC", "HWIO", "NHWC"))
    feat = jnp.maximum(feat + conv_b, 0.0)
    pooled = jnp.mean(feat, axis=(1, 2))                 # AdaptiveAvgPool2d((1,1))
    return pooled @ fc_w.T + fc_b                        # nn.Linear


if __name__ == "__main__":
    # Small, deterministic configuration.
    B, Cin, H, W = 2, 3, 16, 16
    nClass = 8
    featDims = 128          # stand-in for encoder.out_channels[-1]
    k, stride = 4, 4        # strided-conv encoder stand-in (16 -> 4 spatial)

    key = jax.random.PRNGKey(0)
    kx, kw, kb, kfw, kfb = jax.random.split(key, 5)

    x = jax.random.normal(kx, (B, Cin, H, W), dtype=jnp.float32)
    conv_w = jax.random.normal(kw, (k, k, Cin, featDims), dtype=jnp.float32) * 0.05
    conv_b = jax.random.normal(kb, (featDims,), dtype=jnp.float32) * 0.05
    fc_w = jax.random.normal(kfw, (nClass, featDims), dtype=jnp.float32) * 0.05
    fc_b = jax.random.normal(kfb, (nClass,), dtype=jnp.float32) * 0.05

    y = classifier_forward(x, conv_w, conv_b, fc_w, fc_b, stride=stride)
    y = jax.block_until_ready(y)
    assert y.shape == (B, nClass) and y.dtype == jnp.float32

    # Tolerance accounts for bf16 matmul operands (f32 accumulation).
    y_ref = reference_forward(x, conv_w, conv_b, fc_w, fc_b, stride)
    err = float(jnp.max(jnp.abs(y - y_ref)))
    assert err < 2e-2, f"max abs error {err} vs f32 reference"

    print("KERNEL_OK")
</pallas_src>

<mosaic_0001>
module attributes {stable_mosaic.version = 11 : i64} {
  func.func @fused_classifier_kernel(%arg0: i32, %arg1: memref<1x16x48xbf16, #tpu.memory_space<vmem>>, %arg2: memref<48x128xbf16, #tpu.memory_space<vmem>>, %arg3: memref<1x128xf32, #tpu.memory_space<vmem>>, %arg4: memref<128x128xf32, #tpu.memory_space<vmem>>, %arg5: memref<1x128xf32, #tpu.memory_space<vmem>>, %arg6: memref<1x1x128xf32, #tpu.memory_space<vmem>>) attributes {dimension_semantics = [#tpu.dimension_semantics<parallel>], iteration_bounds = array<i64: 2>, scalar_prefetch = 0 : i64, scratch_operands = 0 : i64, tpu.core_type = #tpu.core_type<tc>, window_params = [{transform_indices = @transform_0, window_bounds = array<i64: 1, 16, 48>}, {pipeline_mode = #tpu.pipeline_mode<synchronous>, transform_indices = @transform_1, window_bounds = array<i64: 48, 128>}, {pipeline_mode = #tpu.pipeline_mode<synchronous>, transform_indices = @transform_2, window_bounds = array<i64: 1, 128>}, {pipeline_mode = #tpu.pipeline_mode<synchronous>, transform_indices = @transform_3, window_bounds = array<i64: 128, 128>}, {pipeline_mode = #tpu.pipeline_mode<synchronous>, transform_indices = @transform_4, window_bounds = array<i64: 1, 128>}, {transform_indices = @transform_5, window_bounds = array<i64: 1, 1, 128>}]} {
    %c0 = arith.constant 0 : index
    %c0_0 = arith.constant 0 : index
    %c0_1 = arith.constant 0 : index
    %0 = vector.load %arg1[%c0, %c0_0, %c0_1] : memref<1x16x48xbf16, #tpu.memory_space<vmem>>, vector<1x16x48xbf16>
    %1 = vector.shape_cast %0 : vector<1x16x48xbf16> to vector<16x48xbf16>
    %c0_2 = arith.constant 0 : index
    %c0_3 = arith.constant 0 : index
    %2 = vector.load %arg2[%c0_2, %c0_3] : memref<48x128xbf16, #tpu.memory_space<vmem>>, vector<48x128xbf16>
    %cst = arith.constant dense<0.000000e+00> : vector<16x128xf32>
    %3 = tpu.matmul %1, %2, %cst {dimension_numbers = #tpu.dot_dimension_numbers<[1], [0], [0], [1], [0, 0, 1, 1], [], []>} : vector<16x48xbf16>, vector<48x128xbf16>, vector<16x128xf32> -> vector<16x128xf32>
    %c0_4 = arith.constant 0 : index
    %c0_5 = arith.constant 0 : index
    %4 = vector.load %arg3[%c0_4, %c0_5] : memref<1x128xf32, #tpu.memory_space<vmem>>, vector<1x128xf32>
    %5 = vector.broadcast %4 : vector<1x128xf32> to vector<16x128xf32>
    %6 = arith.addf %3, %5 : vector<16x128xf32>
    %cst_6 = arith.constant 0.000000e+00 : f32
    %7 = vector.broadcast %cst_6 : f32 to vector<16x128xf32>
    %8 = arith.maximumf %6, %7 : vector<16x128xf32>
    %cst_7 = arith.constant dense<0.000000e+00> : vector<128xf32>
    %9 = vector.multi_reduction <add>, %8, %cst_7 [0] : vector<16x128xf32> to vector<128xf32>
    %10 = vector.shape_cast %9 : vector<128xf32> to vector<1x128xf32>
    %c0_8 = arith.constant 0 : index
    %c0_9 = arith.constant 0 : index
    %11 = vector.load %arg4[%c0_8, %c0_9] : memref<128x128xf32, #tpu.memory_space<vmem>>, vector<128x128xf32>
    %cst_10 = arith.constant dense<0.000000e+00> : vector<1x128xf32>
    %12 = tpu.matmul %10, %11, %cst_10 {dimension_numbers = #tpu.dot_dimension_numbers<[1], [0], [0], [1], [0, 0, 1, 1], [], []>} : vector<1x128xf32>, vector<128x128xf32>, vector<1x128xf32> -> vector<1x128xf32>
    %c0_11 = arith.constant 0 : index
    %c0_12 = arith.constant 0 : index
    %13 = vector.load %arg5[%c0_11, %c0_12] : memref<1x128xf32, #tpu.memory_space<vmem>>, vector<1x128xf32>
    %14 = arith.addf %12, %13 : vector<1x128xf32>
    %15 = vector.shape_cast %14 : vector<1x128xf32> to vector<1x1x128xf32>
    %c0_13 = arith.constant 0 : index
    %c0_14 = arith.constant 0 : index
    %c0_15 = arith.constant 0 : index
    %16 = vector.load %arg6[%c0_13, %c0_14, %c0_15] : memref<1x1x128xf32, #tpu.memory_space<vmem>>, vector<1x1x128xf32>
    tpu.vector_store %arg6[%c0_13, %c0_14, %c0_15], %15 {strides = array<i32>} : memref<1x1x128xf32, #tpu.memory_space<vmem>>, vector<1x1x128xf32>,
    return
  }
  func.func @transform_0(%arg0: i32) -> (i32, i32, i32) {
    %c0_i32 = arith.constant 0 : i32
    %c0_i32_0 = arith.constant 0 : i32
    %c0_i32_1 = arith.constant 0 : i32
    return %arg0, %c0_i32, %c0_i32_0 : i32, i32, i32
  }
  func.func @transform_1(%arg0: i32) -> (i32, i32) {
    %c0_i32 = arith.constant 0 : i32
    %c0_i32_0 = arith.constant 0 : i32
    %c0_i32_1 = arith.constant 0 : i32
    return %c0_i32, %c0_i32_0 : i32, i32
  }
  func.func @transform_2(%arg0: i32) -> (i32, i32) {
    %c0_i32 = arith.constant 0 : i32
    %c0_i32_0 = arith.constant 0 : i32
    %c0_i32_1 = arith.constant 0 : i32
    return %c0_i32, %c0_i32_0 : i32, i32
  }
  func.func @transform_3(%arg0: i32) -> (i32, i32) {
    %c0_i32 = arith.constant 0 : i32
    %c0_i32_0 = arith.constant 0 : i32
    %c0_i32_1 = arith.constant 0 : i32
    return %c0_i32, %c0_i32_0 : i32, i32
  }
  func.func @transform_4(%arg0: i32) -> (i32, i32) {
    %c0_i32 = arith.constant 0 : i32
    %c0_i32_0 = arith.constant 0 : i32
    %c0_i32_1 = arith.constant 0 : i32
    return %c0_i32, %c0_i32_0 : i32, i32
  }
  func.func @transform_5(%arg0: i32) -> (i32, i32, i32) {
    %c0_i32 = arith.constant 0 : i32
    %c0_i32_0 = arith.constant 0 : i32
    %c0_i32_1 = arith.constant 0 : i32
    return %arg0, %c0_i32, %c0_i32_0 : i32, i32, i32
  }
}

</mosaic_0001>

<bundles_post_ra>
// kernel: classifier_forward.1
= control target key start
LH: loop header
LB: loop body
LE: loop exit
PB: predicated region body
PF: predicated region fallthrough
CT: control target
= control target key end

     0   :  { %10 = vsyncpa [#allocation3], 0  ;;  %s703_s0 = inlined_call_operand.vmem [shape: bf16[2,16,48], index: 0, kind: input, shape index: {}]   ;;  %s704_s1 = inlined_call_operand.vmem [shape: bf16[48,128], index: 1, kind: input, shape index: {}]   ;;  %s705_s2 = inlined_call_operand.vmem [shape: f32[1,128], index: 2, kind: input, shape index: {}]   ;;  %s706_s3 = inlined_call_operand.vmem [shape: f32[128,128], index: 3, kind: input, shape index: {}]   ;;  %s707_s4 = inlined_call_operand.vmem [shape: f32[1,128], index: 4, kind: input, shape index: {}]   ;;  %s708_s5 = inlined_call_operand.hbm [shape: f32[2,1,128], index: 5, kind: output, shape index: {}]  }
   0x1   :  { %12 = vsyncpa [#allocation3 + $0x1], 0  ;;  %s555_s18 = smov 0   ;;  %s557_s19 = smov 0  }
   0x2   :  { %s559_s20 = smov 0   ;;  %s561_s21 = smov 0  }
   0x3 LB: > { %s576_s22 = sadd.s32 4294967295, %s523_s21   ;;  %s391_s23 = sadd.s32 4294967294, %s523_s21   ;;  %s523_s21 = sphi %s561_s21, %s714_s21   ;;  %s519_s20 = sphi %s559_s20, %s713_s20   ;;  %s515_s19 = sphi %s557_s19, %s712_s19   ;;  %s511_s18 = sphi %s555_s18, %s711_s18  }
   0x4   : > { %s580_s24 = sadd.s32 1, %s523_s21   ;;  %s135_s25 = sadd.s32 1, %s519_s20 }
   0x5   : > { %s132_s26 = ssub.s32 %s523_s21, %s580_s24  ;;  %p145_p0 = scmp.ne.s32.totalorder %s519_s20, %s515_s19 }
   0x6   : > { %p133_p1 = scmp.eq.s32.totalorder %s132_s26, 0  ;;  %p146_p2 = scmp.eq.s32.totalorder %s576_s22, 1 }
   0x7   : > { %p151_p3 = scmp.ne.s32.totalorder %s515_s19, %s511_s18  ;;  %p152_p4 = scmp.eq.s32.totalorder %s391_s23, 1 }
   0x8   : > { %s591_s27 = scalar_select %p133_p1, %s519_s20, %s135_s25  }
   0x9   : > { %p593_p5 = por %p146_p2, %p145_p0  ;;  %p597_p6 = por %p152_p4, %p151_p3 }
   0xa   : > { %p394_p7 = scmp.ge.s32.totalorder %s523_s21, 1  ;;  %p190_p8 = scmp.lt.s32.totalorder %s523_s21, 3 }
   0xc   : > { %p191_p9 = pnand %p394_p7, %p190_p8 }
   0xd   : > { %p217_p10 = scmp.lt.s32.totalorder (!%p191_p9), %s576_s22, 1  ;;  %s215_s23 = sand.u32 (!%p191_p9), 1, %s515_s19  }
   0xe   : > { %194 = sbr.rel (%p191_p9) target bundleno = 314 (0x13a), region = 40  ;;  %s332_s30 = scalar_lea.hbm (!%p191_p9), %s708_s5, %s576_s22 }
   0xf   : > { %s216_s8 = scalar_lea.vmem (!%p191_p9), [#allocation2], %s215_s23  ;;  %s336_s10 = sshll.u32 (!%p191_p9), %s332_s30, 4  ;;  %s337_s10 = int_to_ptr.hbm [resolvable:$true] %s336_s10 }
  0x10   : > { %s334_s9 = sshll.u32 (!%p191_p9), %s216_s8, 4  ;;  %s324_s11 = scalar_lea.sflag (!%p191_p9), [#allocation3], %s215_s23  ;;  %s335_s9 = int_to_ptr.vmem [resolvable:$true] %s334_s9 }
  0x11   : > { %s475_s12 = sshra.s32 (!%p191_p9), %s337_s10, 4  ;;  %s481_s15 = scalar_lea.hbm (!%p191_p9), %s708_s5, 2  ;;  %s476_s12 = int_to_ptr.hbm [resolvable:$true] %s475_s12 }
  0x12   : > { %p482_p0 = scmp.lt.s32.totalorder (!%p191_p9), %s476_s12, %s708_s5 }
  0x13   : > { %v420_v0 = vld [vmem:[%s704_s1 + $0x10] sm:$0xff]  ;;  %v300_v1 = vld [vmem:[%s706_s3 + $0x78] sm:$0xff]  ;;  %v419_v3 = vld [vmem:[%s704_s1 + $0x8] sm:$0xff]  ;;  %s218_s13 = scalar_select %p217_p10, %s576_s22, 1  ;;  %vm258_vm0 = vcmask 392192  }
  0x14   : > { %v299_v2 = vld [vmem:[%s706_s3 + $0x70] sm:$0xff]  ;;  %267 = vmatpush.bf16.msra.mxu0 %v420_v0  ;;  %302 = vmatpush.msra.mxu1 %v300_v1  ;;  %v418_v4 = vld [vmem:[%s704_s1] sm:$0xff]  ;;  %v298_v6 = vld [vmem:[%s706_s3 + $0x68] sm:$0xff] }
  0x15   : > { %s416_s14 = sshll.u32 %s218_s13, 3  ;;  %v297_v7 = vld [vmem:[%s706_s3 + $0x60] sm:$0xff]  ;;  %v296_v8 = vld [vmem:[%s706_s3 + $0x58] sm:$0xff]  ;;  %v295_v9 = vld [vmem:[%s706_s3 + $0x50] sm:$0xff]  ;;  %s477_s13 = scalar_lea.hbm %s476_s12, 1 }
  0x16   : > { %303 = vmatpush.msra.mxu1 %v299_v2  ;;  %s221_s25 = scalar_lea.vmem %s703_s0, %s416_s14  ;;  %v294_v10 = vld [vmem:[%s706_s3 + $0x48] sm:$0xff]  ;;  %v293_v11 = vld [vmem:[%s706_s3 + $0x40] sm:$0xff]  ;;  %v292_v12 = vld [vmem:[%s706_s3 + $0x38] sm:$0xff]  ;;  %p478_p11 = scmp.ne.s32.totalorder %s476_s12, %s477_s13 }
  0x17   : > { %v417_v5 = vld [vmem:[%s221_s25] sm:$0xff]  ;;  %v291_v13 = vld [vmem:[%s706_s3 + $0x30] sm:$0xff]  ;;  %v290_v14 = vld [vmem:[%s706_s3 + $0x28] sm:$0xff]  ;;  %p483_p1 = scmp.lt.s32.totalorder %s481_s15, %s477_s13 }
  0x18   : > { %268 = vmatpush.bf16.msra.mxu0 %v419_v3  ;;  %304 = vmatpush.msra.mxu1 %v298_v6  ;;  %v289_v15 = vld [vmem:[%s706_s3 + $0x20] sm:$0xff]  ;;  %v288_v16 = vld [vmem:[%s706_s3 + $0x18] sm:$0xff]  ;;  %v287_v17 = vld [vmem:[%s706_s3 + $0x10] sm:$0xff]  ;;  %p479_p12 = pnand %p478_p11, %p593_p5 }
  0x19   : > { %v286_v18 = vld [vmem:[%s706_s3 + $0x8] sm:$0xff]  ;;  %v285_v19 = vld [vmem:[%s706_s3] sm:$0xff]  ;;  %p484_p2 = por %p483_p1, %p482_p0 }
  0x1a   : > { %305 = vmatpush.msra.mxu1 %v297_v7  ;;  %v460_v21 = vld [vmem:[%s705_s2] ss:$0 sm:$0xff]  ;;  %p480_p13 = pneg %p479_p12 }
  0x1b   : > { %v301_v34 = vld [vmem:[%s707_s4] sm:$0x1] }
  0x1c   : > { %269 = vmatpush.bf16.msra.mxu0 %v418_v4  ;;  %306 = vmatpush.msra.mxu1 %v296_v8  ;;  %p485_p3 = pnand %p484_p2, %p480_p13 }
  0x1e   : > { %307 = vmatpush.msra.mxu1 %v295_v9 }
  0x1f   : > { %413 = vmatmul.msk.bf16.vlgmr.msra.gmra.mxu0 %vm258_vm0, %v417_v5 }
  0x20   : > { %308 = vmatpush.msra.mxu1 %v294_v10 }
  0x22   : > { %309 = vmatpush.msra.mxu1 %v293_v11 }
  0x24   : > { %310 = vmatpush.msra.mxu1 %v292_v12 }
  0x26   : > { %311 = vmatpush.msra.mxu1 %v291_v13 }
  0x28   : > { %312 = vmatpush.msra.mxu1 %v290_v14 }
  0x2a   : > { %313 = vmatpush.msra.mxu1 %v289_v15 }
  0x2c   : > { %314 = vmatpush.msra.mxu1 %v288_v16 }
  0x2e   : > { %315 = vmatpush.msra.mxu1 %v287_v17 }
  0x30   : > { %316 = vmatpush.msra.mxu1 %v286_v18 }
  0x32   : > { %317 = vmatpush.msra.mxu1 %v285_v19 }
  0x9c   : > { %v271_v20 = vpop.f32.mrf.mxu0 }
  0x9d   : > { %v272_v22 = vadd.f32 %v460_v21, %v271_v20 }
  0x9f   : > { %v276_v25 = vmax.f32 %v272_v22, 0.0 }
  0xa4   : > { %v273_v23 = vpop.f32.mrf.mxu0 }
  0xa5   : > { %v274_v24 = vadd.f32 %v460_v21, %v273_v23 }
  0xa7   : > { %v277_v26 = vmax.f32 %v274_v24, 0.0 }
  0xa9   : > { %v278_v27 = vadd.f32 %v277_v26, %v276_v25 }
  0xab   : > { %v279_v28 = vrot.slane %v278_v27, 4 }
  0xad   : > { %v280_v29 = vadd.f32 %v279_v28, %v278_v27 }
  0xaf   : > { %v281_v30 = vrot.slane %v280_v29, 2 }
  0xb1   : > { %v282_v31 = vadd.f32 %v281_v30, %v280_v29 }
  0xb3   : > { %v283_v32 = vrot.slane %v282_v31, 1 }
  0xb5   : > { %v284_v33 = vadd.f32 %v283_v32, %v282_v31 }
  0xb7   : > { %318 = vmatmul.f32.vlgmr.msra.gmra.mxu1 %v284_v33 }
 0x134   : > { %v319_v35 = vpop.f32.mrf.mxu1 }
 0x135   : > { %v320_v36 = vadd.f32 %v319_v35, %v301_v34 }
 0x137   : > { %322 = vst [vmem:[%s216_s8] sm:$0x1] %v320_v36 }
 0x138   : > { %488 = shalt.err (!%p485_p3)
}
 0x139   : > { %421 = dma.vmem_to_hbm [thread:$0]  (%p593_p5), %s335_s9, 16, %s337_s10, %s324_s11  }
 0x13a PF: > { %p427_p4 = scmp.ge.s32.totalorder %s523_s21, 2  ;;  %s348_s23 = sand.u32 1, %s511_s18  }
 0x13b   : > { %s349_s25 = scalar_lea.sflag [#allocation3], %s348_s23 }
 0x13c   : > { %p424_p7 = pnand %p427_p4, %p597_p6 }
 0x13e   : > { %p425_p8 = pneg %p424_p7 }
 0x140   : > { %506 = dma.done.wait (%p425_p8), %s349_s25, 16  }
 0x141   : > { %508 = vsyncadd (%p425_p8), %s349_s25, 4294967280  ;;  %p15_p9 = scmp.ge.s32.totalorder %s580_s24, 4   ;;  %s711_s18 = smov %s515_s19 }
 0x142   : > { %s712_s19 = smov %s519_s20  ;;  %s713_s20 = smov %s591_s27 }
 0x143   : > { %s714_s21 = smov %s580_s24  ;;  %17 = sbr.rel (!%p15_p9) target bundleno = 3 (0x3), region = 75 }
 0x148   :  { %354 = vsyncpa [#allocation3], 1 }
 0x149   :  { %356 = vsyncpa [#allocation3 + $0x1], 1 }

</bundles_post_ra>
